<compile_context>
chip_gen: v7x
topology: tpu7x:2x2x1
jax: 0.10.0
libtpu: 0.0.40
codegen_flags: <defaults>
</compile_context>

<pallas_src>
import functools
import math

import jax
import jax.numpy as jnp
from jax.experimental import pallas as pl
from jax.experimental.pallas import tpu as pltpu


def _depth_kernel(method, w_ref, st_ref, en_ref, bounds_ref, o_ref):
    """Per-tile depth.

    w_ref, st_ref, en_ref: [TB, N]  (rays on sublanes, samples on lanes)
    bounds_ref:            [2]      SMEM f32 = (steps.min(), steps.max()); expected only
    o_ref:                 [TB, 1]  per-ray depth
    """
    w = w_ref[...].astype(jnp.float32)
    s = (st_ref[...].astype(jnp.float32) + en_ref[...].astype(jnp.float32)) * 0.5
    tb, n = w.shape

    if method == "expected":
        eps = 1e-10
        num = jnp.sum(w * s, axis=-1, keepdims=True)          # [TB, 1]
        den = jnp.sum(w, axis=-1, keepdims=True) + eps        # [TB, 1]
        depth = num / den
        # torch.clip(depth, steps.min(), steps.max()) with GLOBAL bounds from SMEM.
        depth = jnp.clip(depth, bounds_ref[0], bounds_ref[1])
        o_ref[...] = depth
    else:  # "median"
        # Inclusive cumsum along samples: cum = w @ tri with tri[i, j] = (i <= j),
        # generated in-kernel (no extra HBM input) and run on the idle MXU.
        r = jax.lax.broadcasted_iota(jnp.int32, (n, n), 0)
        c = jax.lax.broadcasted_iota(jnp.int32, (n, n), 1)
        tri = (r <= c).astype(jnp.float32)
        cum = jnp.dot(w, tri, preferred_element_type=jnp.float32,
                      precision=jax.lax.Precision.HIGHEST)     # [TB, N]
        # searchsorted(cum, 0.55, side='left') on a sorted row == count of cum < 0.55
        below = (cum < 0.55).astype(jnp.int32)
        idx = jnp.sum(below, axis=-1, keepdims=True)           # [TB, 1]
        idx = jnp.minimum(idx, n - 1)                          # clamp upper
        # gather(steps, idx) as a fused select-and-reduce (no dynamic gather on TPU)
        col = jax.lax.broadcasted_iota(jnp.int32, (tb, n), 1)
        o_ref[...] = jnp.sum(jnp.where(col == idx, s, 0.0), axis=-1, keepdims=True)


def underwater_depth_render(weights, starts, ends, far_plane=10.0, method="median"):
    """JAX/Pallas equivalent of UnderWaterDepthRenderer.forward.

    weights: [*batch, N, 1]
    starts:  [*batch, N, 1]   (ray_samples.frustums.starts)
    ends:    [*batch, N, 1]   (ray_samples.frustums.ends)
    returns: [*batch, 1]
    """
    del far_plane  # stored on the module but unused in forward

    batch_shape = weights.shape[:-2]
    N = weights.shape[-2]
    B = int(math.prod(batch_shape)) if batch_shape else 1

    def flat(x):
        # [*batch, N, 1] -> [B, N]: free contiguous reshape, NO transpose.
        return x.reshape(B, N)

    w, st, en = flat(weights), flat(starts), flat(ends)

    # Tile size from the lane-PADDED VMEM footprint (last dim N pads to 128 lanes),
    # targeting ~8 MiB for the 3 double-buffered input slabs.
    padded_row_bytes = pl.cdiv(N, 128) * 128 * 4
    tb_cap = max(8, ((8 * 1024 * 1024) // (6 * padded_row_bytes)) // 8 * 8)
    TB = min(tb_cap, pl.cdiv(B, 8) * 8)
    grid = pl.cdiv(B, TB)
    B_pad = grid * TB
    if B_pad != B:
        pad = ((0, B_pad - B), (0, 0))
        w, st, en = jnp.pad(w, pad), jnp.pad(st, pad), jnp.pad(en, pad)

    if method == "expected":
        # Tiny fused XLA reduce (no materialized steps tensor); preserves global clip.
        steps_min = jnp.min((starts + ends) * 0.5)
        steps_max = jnp.max((starts + ends) * 0.5)
        bounds = jnp.stack([steps_min, steps_max]).astype(jnp.float32)
    else:
        bounds = jnp.zeros((2,), jnp.float32)

    tile_spec = lambda: pl.BlockSpec((TB, N), lambda i: (i, 0))

    out = pl.pallas_call(
        functools.partial(_depth_kernel, method),
        out_shape=jax.ShapeDtypeStruct((B_pad, 1), jnp.float32),
        grid=(grid,),
        in_specs=[
            tile_spec(),   # weights
            tile_spec(),   # starts
            tile_spec(),   # ends
            pl.BlockSpec(memory_space=pltpu.MemorySpace.SMEM),  # clip bounds
        ],
        out_specs=pl.BlockSpec((TB, 1), lambda i: (i, 0)),
        compiler_params=pltpu.CompilerParams(
            dimension_semantics=("parallel",),         # megacore sharding on v7x
            vmem_limit_bytes=32 * 1024 * 1024,         # safe on v5e/v6e/v7x; usage ~8 MiB
        ),
    )(w, st, en, bounds)

    return out[:B, 0].reshape(*batch_shape, 1)


def _reference(weights, starts, ends, method):
    """Pure-JAX reference mirroring the PyTorch forward, for verification."""
    steps = (starts + ends) / 2.0
    if method == "expected":
        eps = 1e-10
        depth = jnp.sum(weights * steps, axis=-2) / (jnp.sum(weights, axis=-2) + eps)
        return jnp.clip(depth, steps.min(), steps.max())
    # median
    cum = jnp.cumsum(weights[..., 0], axis=-1)
    idx = jnp.sum((cum < 0.55).astype(jnp.int32), axis=-1, keepdims=True)
    idx = jnp.clip(idx, 0, steps.shape[-2] - 1)
    return jnp.take_along_axis(steps[..., 0], idx, axis=-1)


if __name__ == "__main__":
    key = jax.random.PRNGKey(0)
    k1, k2 = jax.random.split(key)

    batch = (2, 4)   # *batch
    N = 16           # num_samples

    # Non-negative weights that sum roughly to 1 along the sample axis.
    logits = jax.random.normal(k1, (*batch, N, 1), dtype=jnp.float32)
    weights = jax.nn.softmax(logits, axis=-2)

    # Monotone sample bins along each ray (starts < ends).
    edges = jnp.linspace(0.1, 9.5, N + 1, dtype=jnp.float32)
    jitter = 0.05 * jax.random.uniform(k2, (*batch, N, 1), dtype=jnp.float32)
    starts = jnp.broadcast_to(edges[:-1][:, None], (*batch, N, 1)) + jitter
    ends = jnp.broadcast_to(edges[1:][:, None], (*batch, N, 1)) + jitter

    ok = True
    for method in ("median", "expected"):
        depth = underwater_depth_render(weights, starts, ends,
                                        far_plane=10.0, method=method)
        depth = jax.block_until_ready(depth)
        ref = _reference(weights, starts, ends, method)
        if depth.shape != (*batch, 1):
            ok = False
        if not jnp.allclose(depth, ref, atol=1e-5, rtol=1e-5):
            ok = False

    if ok:
        print("KERNEL_OK")
    else:
        print("KERNEL_MISMATCH")
</pallas_src>

<mosaic_0001>
module attributes {stable_mosaic.version = 11 : i64} {
  func.func @_depth_kernel(%arg0: i32, %arg1: memref<8x16xf32, #tpu.memory_space<vmem>>, %arg2: memref<8x16xf32, #tpu.memory_space<vmem>>, %arg3: memref<8x16xf32, #tpu.memory_space<vmem>>, %arg4: memref<2xf32, #tpu.memory_space<smem>>, %arg5: memref<8x1xf32, #tpu.memory_space<vmem>>) attributes {dimension_semantics = [#tpu.dimension_semantics<parallel>], iteration_bounds = array<i64: 1>, scalar_prefetch = 0 : i64, scratch_operands = 0 : i64, tpu.core_type = #tpu.core_type<tc>, window_params = [{transform_indices = @transform_0, window_bounds = array<i64: 8, 16>}, {transform_indices = @transform_1, window_bounds = array<i64: 8, 16>}, {transform_indices = @transform_2, window_bounds = array<i64: 8, 16>}, {transform_indices = @transform_3, window_bounds = array<i64: 2>}, {transform_indices = @transform_4, window_bounds = array<i64: 8, 1>}]} {
    %c0 = arith.constant 0 : index
    %c0_0 = arith.constant 0 : index
    %0 = vector.load %arg1[%c0, %c0_0] : memref<8x16xf32, #tpu.memory_space<vmem>>, vector<8x16xf32>
    %c0_1 = arith.constant 0 : index
    %c0_2 = arith.constant 0 : index
    %1 = vector.load %arg2[%c0_1, %c0_2] : memref<8x16xf32, #tpu.memory_space<vmem>>, vector<8x16xf32>
    %c0_3 = arith.constant 0 : index
    %c0_4 = arith.constant 0 : index
    %2 = vector.load %arg3[%c0_3, %c0_4] : memref<8x16xf32, #tpu.memory_space<vmem>>, vector<8x16xf32>
    %3 = arith.addf %1, %2 : vector<8x16xf32>
    %cst = arith.constant 5.000000e-01 : f32
    %4 = vector.broadcast %cst : f32 to vector<8x16xf32>
    %5 = arith.mulf %3, %4 : vector<8x16xf32>
    %6 = tpu.iota {dimensions = array<i32: 0>} : vector<16x16xi32>
    %7 = tpu.iota {dimensions = array<i32: 1>} : vector<16x16xi32>
    %8 = arith.cmpi sle, %6, %7 : vector<16x16xi32>
    %9 = arith.extui %8 : vector<16x16xi1> to vector<16x16xi32>
    %10 = arith.sitofp %9 : vector<16x16xi32> to vector<16x16xf32>
    %cst_5 = arith.constant dense<0.000000e+00> : vector<8x16xf32>
    %11 = tpu.matmul %0, %10, %cst_5 {dimension_numbers = #tpu.dot_dimension_numbers<[1], [0], [0], [1], [0, 0, 1, 1], [], []>, precision = #tpu.contract_precision<fp32>} : vector<8x16xf32>, vector<16x16xf32>, vector<8x16xf32> -> vector<8x16xf32>
    %cst_6 = arith.constant 5.500000e-01 : f32
    %12 = vector.broadcast %cst_6 : f32 to vector<8x16xf32>
    %13 = arith.cmpf olt, %11, %12 : vector<8x16xf32>
    %14 = arith.extui %13 : vector<8x16xi1> to vector<8x16xi32>
    %cst_7 = arith.constant dense<0> : vector<8xi32>
    %15 = vector.multi_reduction <add>, %14, %cst_7 [1] : vector<8x16xi32> to vector<8xi32>
    %16 = vector.shape_cast %15 : vector<8xi32> to vector<8x1xi32>
    %c15_i32 = arith.constant 15 : i32
    %17 = vector.broadcast %c15_i32 : i32 to vector<8x1xi32>
    %18 = arith.minsi %16, %17 : vector<8x1xi32>
    %19 = tpu.iota {dimensions = array<i32: 1>} : vector<8x16xi32>
    %20 = vector.broadcast %18 : vector<8x1xi32> to vector<8x16xi32>
    %21 = arith.cmpi eq, %19, %20 : vector<8x16xi32>
    %cst_8 = arith.constant 0.000000e+00 : f32
    %22 = vector.broadcast %cst_8 : f32 to vector<8x16xf32>
    %23 = arith.select %21, %5, %22 : vector<8x16xi1>, vector<8x16xf32>
    %cst_9 = arith.constant dense<0.000000e+00> : vector<8xf32>
    %24 = vector.multi_reduction <add>, %23, %cst_9 [1] : vector<8x16xf32> to vector<8xf32>
    %25 = vector.shape_cast %24 : vector<8xf32> to vector<8x1xf32>
    %c0_10 = arith.constant 0 : index
    %c0_11 = arith.constant 0 : index
    %26 = vector.load %arg5[%c0_10, %c0_11] : memref<8x1xf32, #tpu.memory_space<vmem>>, vector<8x1xf32>
    tpu.vector_store %arg5[%c0_10, %c0_11], %25 {strides = array<i32>} : memref<8x1xf32, #tpu.memory_space<vmem>>, vector<8x1xf32>,
    return
  }
  func.func @transform_0(%arg0: i32) -> (i32, i32) {
    %c0_i32 = arith.constant 0 : i32
    %c0_i32_0 = arith.constant 0 : i32
    return %arg0, %c0_i32 : i32, i32
  }
  func.func @transform_1(%arg0: i32) -> (i32, i32) {
    %c0_i32 = arith.constant 0 : i32
    %c0_i32_0 = arith.constant 0 : i32
    return %arg0, %c0_i32 : i32, i32
  }
  func.func @transform_2(%arg0: i32) -> (i32, i32) {
    %c0_i32 = arith.constant 0 : i32
    %c0_i32_0 = arith.constant 0 : i32
    return %arg0, %c0_i32 : i32, i32
  }
  func.func @transform_3(%arg0: i32) -> i32 {
    %c0_i32 = arith.constant 0 : i32
    %c0_i32_0 = arith.constant 0 : i32
    return %c0_i32 : i32
  }
  func.func @transform_4(%arg0: i32) -> (i32, i32) {
    %c0_i32 = arith.constant 0 : i32
    %c0_i32_0 = arith.constant 0 : i32
    return %arg0, %c0_i32 : i32, i32
  }
}

</mosaic_0001>

<bundles_post_ra>
// kernel: tpu_custom_call.1
= control target key start
LH: loop header
LB: loop body
LE: loop exit
PB: predicated region body
PF: predicated region fallthrough
CT: control target
= control target key end

     0   :  { %9 = vsyncpa [#allocation3], 0  ;;  %s863_s0 = inlined_call_operand.hbm [shape: f32[8,16], index: 0, kind: input, shape index: {}]   ;;  %s864_s1 = inlined_call_operand.hbm [shape: f32[8,16], index: 1, kind: input, shape index: {}]   ;;  %s865_s2 = inlined_call_operand.hbm [shape: f32[8,16], index: 2, kind: input, shape index: {}]   ;;  %s866_s3 = inlined_call_operand.vmem [shape: f32[2], index: 3, kind: input, shape index: {}]   ;;  %s867_s4 = inlined_call_operand.vmem [shape: f32[8,1], index: 4, kind: output, shape index: {}]  }
   0x1   :  { %10 = vsyncpa [#allocation6], 0 }
   0x2   :  { %11 = vsyncpa [#allocation4], 0  ;;  %s763_s15 = smov [#allocation5]   ;;  %s764_s17 = smov [#allocation2]  }
   0x3   :  { %s28_s16 = sshll.u32 %s763_s15, 4  ;;  %s18_s18 = sshll.u32 %s764_s17, 4  ;;  %s29_s16 = int_to_ptr.vmem [resolvable:$true] %s28_s16  ;;  %s19_s18 = int_to_ptr.vmem [resolvable:$true] %s18_s18 }
   0x4   :  { %s679_s21 = scalar_lea.hbm %s864_s1, 128 }
   0x5   :  { %p680_p0 = scmp.ne.s32.totalorder %s864_s1, %s679_s21  ;;  %p683_p1 = scmp.lt.u32.totalorder %s679_s21, %s864_s1 }
   0x7   :  { %p685_p2 = pnand %p683_p1, %p680_p0 }
   0x9   :  { %688 = shalt.err (!%p685_p2)
}
   0xa   :  { %s689_s26 = scalar_lea.vmem %s29_s16, 128  ;;  %p694_p4 = scmp.lt.s32.totalorder %s29_s16, %s29_s16 }
   0xb   :  { %p690_p3 = scmp.ne.s32.totalorder %s29_s16, %s689_s26  ;;  %p695_p5 = scmp.lt.s32.totalorder %s689_s26, %s689_s26 }
   0xd   :  { %p696_p6 = por %p695_p5, %p694_p4 }
   0xf   :  { %p697_p7 = pnand %p696_p6, %p690_p3 }
  0x11   :  { %700 = shalt.err (!%p697_p7)
}
  0x12   :  { %31 = dma.hbm_to_vmem [thread:$0]  %s864_s1, 128, %s29_s16, [#allocation6]  }
  0x13   :  { %s701_s5 = scalar_lea.hbm %s863_s0, 128 }
  0x14   :  { %p702_p8 = scmp.ne.s32.totalorder %s863_s0, %s701_s5  ;;  %p705_p9 = scmp.lt.u32.totalorder %s701_s5, %s863_s0 }
  0x16   :  { %p707_p10 = pnand %p705_p9, %p702_p8 }
  0x18   :  { %710 = shalt.err (!%p707_p10)
}
  0x19   :  { %s711_s10 = scalar_lea.vmem %s19_s18, 128  ;;  %p716_p12 = scmp.lt.s32.totalorder %s19_s18, %s19_s18 }
  0x1a   :  { %p712_p11 = scmp.ne.s32.totalorder %s19_s18, %s711_s10  ;;  %p717_p13 = scmp.lt.s32.totalorder %s711_s10, %s711_s10 }
  0x1c   :  { %p718_p0 = por %p717_p13, %p716_p12 }
  0x1e   :  { %p719_p1 = pnand %p718_p0, %p712_p11 }
  0x20   :  { %722 = shalt.err (!%p719_p1)
}
  0x21   :  { %21 = dma.hbm_to_vmem [thread:$0]  %s863_s0, 128, %s19_s18, [#allocation3]  }
  0x22   :  { %s48_s14 = sshll.u32 %s866_s3, 4  ;;  %s765_s15 = smov [#allocation7]   ;;  %s49_s14 = int_to_ptr.vmem [resolvable:$true] %s48_s14 }
  0x23   :  { %s38_s16 = sshll.u32 %s765_s15, 4  ;;  %s723_s20 = scalar_lea.hbm %s865_s2, 128  ;;  %s39_s16 = int_to_ptr.vmem [resolvable:$true] %s38_s16 }
  0x24   :  { %p724_p2 = scmp.ne.s32.totalorder %s865_s2, %s723_s20  ;;  %p727_p3 = scmp.lt.u32.totalorder %s723_s20, %s865_s2 }
  0x26   :  { %p729_p4 = pnand %p727_p3, %p724_p2 }
  0x28   :  { %732 = shalt.err (!%p729_p4)
}
  0x29   :  { %s733_s0 = scalar_lea.vmem %s39_s16, 128  ;;  %p738_p6 = scmp.lt.s32.totalorder %s39_s16, %s39_s16 }
  0x2a   :  { %p734_p5 = scmp.ne.s32.totalorder %s39_s16, %s733_s0  ;;  %p739_p7 = scmp.lt.s32.totalorder %s733_s0, %s733_s0 }
  0x2c   :  { %p740_p8 = por %p739_p7, %p738_p6 }
  0x2e   :  { %p741_p9 = pnand %p740_p8, %p734_p5 }
  0x30   :  { %744 = shalt.err (!%p741_p9)
}
  0x31   :  { %41 = dma.hbm_to_vmem [thread:$0]  %s865_s2, 128, %s39_s16, [#allocation6]  }
  0x32   :  { %s745_s25 = scalar_lea.vmem %s49_s14, 16  ;;  %p750_p11 = scmp.lt.s32.totalorder %s49_s14, %s49_s14 }
  0x33   :  { %p746_p10 = scmp.ne.s32.totalorder %s49_s14, %s745_s25  ;;  %p751_p12 = scmp.lt.s32.totalorder %s745_s25, %s745_s25 }
  0x35   :  { %p752_p13 = por %p751_p12, %p750_p11 }
  0x37   :  { %p753_p0 = pnand %p752_p13, %p746_p10 }
  0x39   :  { %756 = shalt.err (!%p753_p0)
}
  0x3a   :  { %s766_s26 = smov [#allocation8]  }
  0x3b   :  { %51 = dma.vmem_to_smem %s49_s14, 16, %s766_s26, [#allocation4]  }
  0x3c   :  { %757 = dma.done.wait [#allocation3], 128  }
  0x3d   :  { %758 = vsyncadd [#allocation3], 4294967168 }
  0x3e   :  { %759 = dma.done.wait [#allocation6], 256  }
  0x3f   :  { %760 = vsyncadd [#allocation6], 4294967040 }
  0x40   :  { %761 = dma.done.wait [#allocation4], 16  }
  0x41   :  { %762 = vsyncadd [#allocation4], 4294967280 }
  0x42   :  { %64 = sfence }
  0x43   :  { %v70_v0 = vlaneseq  ;;  %v65_v1 = vld [vmem:[#allocation2] sm:$0xff]  ;;  %v767_v2 = vmov 0.0|0.0   ;;  %vm81_vm0 = vcmask 130048   ;;  %vm768_vm1 = vmmov 0   ;;  %v66_v42 = vld [vmem:[#allocation5] sm:$0xff]  ;;  %v67_v43 = vld [vmem:[#allocation7] sm:$0xff] }
  0x44   :  { %652 = vmatprep.subr.bf16.mxu0 %v767_v2  ;;  %643 = vmatprep.subr.bf16.mxu1 %v767_v2  ;;  %v769_v5 = vmov 0.0   ;;  %v83_v6 = vsel %vm81_vm0, %v65_v1, 0  ;;  %v770_v17 = vmov 1.0|1.0   ;;  %v771_v33 = vmov 0  }
  0x45   :  { %v71_v3 = vshrl.u32 %v70_v0, 7  ;;  %v836_v4 = vand.u32 127, %v70_v0  ;;  %626 = vmatprep.mubr.msk.f32.mxu0 %vm768_vm1, %v769_v5  ;;  %605 = vmatprep.mubr.msk.f32.mxu1 %vm768_vm1, %v769_v5  ;;  %v152_v7 = vand.u32 4294901760, %v83_v6  ;;  %v68_v45 = vadd.f32 %v67_v43, %v66_v42 }
  0x46   :  { %vm566_vm8 = vcmask 7168  }
  0x47   :  { %v72_v8 = vadd.s32 8, %v71_v3  ;;  %vm75_vm2 = vcmp.le.s32.totalorder %v71_v3, %v836_v4  ;;  %v153_v10 = vsub.f32 %v83_v6, %v152_v7  ;;  %v69_v49 = vmul.f32 0.5, %v68_v45 }
  0x48   :  { %v575_v9 = vsel %vm75_vm2, 1.0, %v769_v5 }
  0x49   :  { %vm76_vm3 = vcmp.le.s32.totalorder %v72_v8, %v836_v4  ;;  %v164_v11 = vsub.f32 %v575_v9, %v575_v9  ;;  %v154_v14 = vand.u32 4294901760, %v153_v10 }
  0x4a   :  { %v576_v12 = vsel %vm76_vm3, 1.0, %v769_v5  ;;  %vm843_vm4 = vmpackc.low %vm76_vm3, %vm75_vm2 }
  0x4b   :  { %v165_v15 = vand.u32 4294901760, %v164_v11  ;;  %v171_v16 = vsub.f32 %v576_v12, %v576_v12  ;;  %654 = vmatpush3.bf16.msk.msra.mxu0 %vm843_vm4, %v770_v17  ;;  %645 = vmatpush3.bf16.msk.msra.mxu1 %vm843_vm4, %v770_v17  ;;  %v155_v18 = vsub.f32 %v153_v10, %v154_v14 }
  0x4c   :  { %655 = vmatprep.subr.bf16.mxu0 %v767_v2  ;;  %646 = vmatprep.subr.bf16.mxu1 %v767_v2 }
  0x4d   :  { %v166_v19 = vsub.f32 %v164_v11, %v165_v15  ;;  %v172_v20 = vand.u32 4294901760, %v171_v16  ;;  %v156_v21 = vand.u32 4294901760, %v155_v18  ;;  %v650_v27 = vpack.c.bf16 %v171_v16, %v164_v11 }
  0x4e   :  { %627 = vmatmul.mubr.f32.vlgmr.msra.gmra.mrb[0].mxu0 %v154_v14 }
  0x4f   :  { %v167_v22 = vand.u32 4294901760, %v166_v19  ;;  %v173_v23 = vsub.f32 %v171_v16, %v172_v20  ;;  %v656_v24 = vpack.c.bf16 %v172_v20, %v165_v15  ;;  %633 = vmatprep.mubr.msk.f32.mxu0 %vm768_vm1, %v769_v5  ;;  %606 = vmatmul.mubr.f32.vlgmr.msra.gmra.mrb[0].mxu1 %v156_v21 }
  0x50   :  { %612 = vmatprep.mubr.msk.f32.mxu1 %vm768_vm1, %v769_v5 }
  0x51   :  { %v174_v25 = vand.u32 4294901760, %v173_v23  ;;  %657 = vmatpush3.bf16.msra.mxu0 %v656_v24 }
  0x52   :  { %658 = vmatprep.subr.bf16.mxu0 %v767_v2 }
  0x53   :  { %v647_v26 = vpack.c.bf16 %v174_v25, %v167_v22 }
  0x55   :  { %648 = vmatpush3.bf16.msra.mxu1 %v647_v26 }
  0x56   :  { %634 = vmatmul.mubr.f32.vlgmr.msra.gmra.mrb[0].mxu0 %v152_v7  ;;  %649 = vmatprep.subr.bf16.mxu1 %v767_v2 }
  0x57   :  { %660 = vmatpush3.bf16.msk.msra.mxu0 %vm843_vm4, %v770_v17  ;;  %640 = vmatprep.mubr.msk.f32.mxu0 %vm768_vm1, %v769_v5 }
  0x58   :  { %613 = vmatmul.mubr.f32.vlgmr.msra.gmra.mrb[0].mxu1 %v152_v7 }
  0x59   :  { %651 = vmatpush3.bf16.msra.mxu1 %v650_v27  ;;  %619 = vmatprep.mubr.msk.f32.mxu1 %vm768_vm1, %v769_v5 }
  0x5e   :  { %641 = vmatmul.mubr.f32.vlgmr.msra.gmra.mrb[0].mxu0 %v152_v7 }
  0x60   :  { %620 = vmatmul.mubr.f32.vlgmr.msra.gmra.mrb[0].mxu1 %v153_v10 }
 0x131   :  { %v540_v28 = vpop.f32.mrb[0].mxu0 }
 0x132   :  { %v642_v29 = vpop.f32.mrb[1].mxu0 }
 0x133   :  { %v315_v30 = vpop.f32.mrb[0].mxu1 }
 0x134   :  { %v661_v31 = vadd.f32 %v540_v28, %v315_v30  ;;  %v621_v32 = vpop.f32.mrb[1].mxu1 }
 0x136   :  { %vm544_vm5 = vcmp.lt.f32.partialorder %v661_v31, 0.55 }
 0x137   :  { %v545_v34 = vsel %vm544_vm5, 1, %v771_v33 }
 0x138   :  { %v546_v35 = vsel %vm81_vm0, %v545_v34, 0 }
 0x139   :  { %v548_v36 = vshrl.u32 %v546_v35, 16  ;;  %v547_v38 = vand.u32 65535, %v546_v35 }
 0x13b   :  { %v550_v37 = vcvt.s32.f32 %v548_v36  ;;  %v549_v39 = vcvt.s32.f32 %v547_v38 }
 0x13d   :  { %553 = vadd.xlane.f32.xlu0 %v550_v37 }
 0x141   :  { %551 = vadd.xlane.f32.xlu0 %v549_v39 }
 0x1ca   :  { %v554_v40 = vpop.xlane.xlu0 %553 }
 0x1cb   :  { %v556_v41 = vcvt.f32.s32 %v554_v40 }
 0x1cd   :  { %v557_v46 = vshll.u32 %v556_v41, 16 }
 0x1ce   :  { %v552_v44 = vpop.xlane.xlu0 %551 }
 0x1cf   :  { %v555_v47 = vcvt.f32.s32 %v552_v44 }
 0x1d1   :  { %v558_v48 = vadd.s32 %v557_v46, %v555_v47 }
 0x1d3   :  { %vm559_vm6 = vcmp.lt.s32.totalorder %v558_v48, 15 }
 0x1d4   :  { %v560_v50 = vsel %vm559_vm6, %v558_v48, 15 }
 0x1d5   :  { %vm561_vm7 = vcmp.eq.s32.totalorder %v836_v4, %v560_v50 }
 0x1d6   :  { %v562_v51 = vsel %vm561_vm7, %v69_v49, 0.0 }
 0x1d7   :  { %v563_v52 = vsel %vm81_vm0, %v562_v51, 0.0 }
 0x1d8   :  { %564 = vadd.xlane.f32.xlu1 %v563_v52 }
 0x265   :  { %v565_v53 = vpop.xlane.xlu1 %564 }
 0x266   :  { %567 = vst.msk [vmem:[%s867_s4] sm:$0xff] %vm566_vm8, %v565_v53 }
 0x267   :  { %572 = vsyncpa [#allocation3], 1 }
 0x268   :  { %573 = vsyncpa [#allocation6], 1 }
 0x269   :  { %574 = vsyncpa [#allocation4], 1 }

</bundles_post_ra>
